<compile_context>
chip_gen: v6e
topology: v6e:2x2x1
jax: 0.10.0
libtpu: 0.0.40
codegen_flags: <defaults>
</compile_context>

<pallas_src>
import jax
import jax.numpy as jnp
from jax.experimental import pallas as pl
from jax.experimental.pallas import tpu as pltpu


def _round_up(x, m):
    return ((x + m - 1) // m) * m


def _choose_tile_m(n, max_tile=1024):
    """Large tiles (overhead amortization) but >=2 grid steps when possible (megacore)."""
    n_pad = _round_up(max(n, 1), 8)
    if n_pad <= 8:
        return 8
    half = _round_up(pl.cdiv(n_pad, 2), 8)   # splitting in two keeps both v7x TCs busy
    return min(max_tile, half)


def _mlp_kernel(x_ref, w1_ref, b1_ref, w2_ref, b2_ref, o_ref):
    # x_ref: (tm, D) bf16 row tile; weights whole-array resident (tiny at these sizes).
    x = x_ref[...]                                                        # bf16
    h = jnp.dot(x, w1_ref[...], preferred_element_type=jnp.float32)      # MXU, f32 acc
    h = jnp.maximum(h + b1_ref[...], 0.0)                                 # f32 bias + ReLU (VPU)
    o = jnp.dot(h.astype(w2_ref.dtype), w2_ref[...],
                preferred_element_type=jnp.float32)                       # MXU, f32 acc
    o_ref[...] = (o + b2_ref[...]).astype(o_ref.dtype)                    # lane-dense (C_pad=128) store


def net_forward(features, w1, b1, w2, b2, *, max_tile_m=1024):
    N, D = features.shape
    H = w1.shape[1]
    C = w2.shape[1]
    LANE = 128

    # --- lane-dense output: zero-pad class dim to a multiple of 128 lanes ---
    C_pad = _round_up(C, LANE)

    # --- bf16 streaming of the MXU operands (halves HBM traffic for the dominant x stream) ---
    x = features.astype(jnp.bfloat16)
    w1b = w1.astype(jnp.bfloat16)
    w2b = jnp.zeros((H, C_pad), jnp.bfloat16).at[:, :C].set(w2.astype(jnp.bfloat16))
    b1f = b1.reshape(1, H).astype(jnp.float32)
    b2f = jnp.zeros((1, C_pad), jnp.float32).at[:, :C].set(b2.reshape(1, C).astype(jnp.float32))

    # --- row tiling: big tiles, arbitrary N via wrapper-side padding ---
    tm = _choose_tile_m(N, max_tile_m)
    N_pad = _round_up(N, tm)
    if N_pad != N:
        x = jnp.pad(x, ((0, N_pad - N), (0, 0)))

    grid = (N_pad // tm,)
    out = pl.pallas_call(
        _mlp_kernel,
        out_shape=jax.ShapeDtypeStruct((N_pad, C_pad), jnp.float32),
        grid=grid,
        in_specs=[
            pl.BlockSpec((tm, D), lambda i: (i, 0)),      # features row tile (bf16)
            pl.BlockSpec((D, H), lambda i: (0, 0)),        # W1 whole (bf16)
            pl.BlockSpec((1, H), lambda i: (0, 0)),        # b1 (f32)
            pl.BlockSpec((H, C_pad), lambda i: (0, 0)),    # W2 whole, class-padded (bf16)
            pl.BlockSpec((1, C_pad), lambda i: (0, 0)),    # b2, class-padded (f32)
        ],
        out_specs=pl.BlockSpec((tm, C_pad), lambda i: (i, 0)),
        compiler_params=pltpu.CompilerParams(
            dimension_semantics=("parallel",),
        ),
    )(x, w1b, b1f, w2b, b2f)

    # strip row / class padding (layout plumbing handled by XLA)
    return out[:N, :C]


def net_forward_ref(features, w1, b1, w2, b2):
    # Mirrors the kernel's numerics: bf16 MXU operands, f32 accumulation/bias/ReLU.
    xb = features.astype(jnp.bfloat16)
    h = jnp.dot(xb, w1.astype(jnp.bfloat16), preferred_element_type=jnp.float32)
    h = jnp.maximum(h + b1.reshape(1, -1).astype(jnp.float32), 0.0)
    o = jnp.dot(h.astype(jnp.bfloat16), w2.astype(jnp.bfloat16),
                preferred_element_type=jnp.float32)
    return o + b2.reshape(1, -1).astype(jnp.float32)


if __name__ == "__main__":
    key = jax.random.PRNGKey(0)
    k_x, k_w1, k_b1, k_w2, k_b2 = jax.random.split(key, 5)

    N, D, H, C = 128, 32, 64, 16   # nodes, feat dim, hidden dim, n_cls
    features = jax.random.normal(k_x, (N, D), dtype=jnp.float32)

    # Deterministic parameter init (synthetic; no checkpoint load).
    w1 = jax.random.normal(k_w1, (D, H), dtype=jnp.float32) * (1.0 / jnp.sqrt(D))
    b1 = jax.random.normal(k_b1, (1, H), dtype=jnp.float32) * 0.01
    w2 = jax.random.normal(k_w2, (H, C), dtype=jnp.float32) * (1.0 / jnp.sqrt(H))
    b2 = jax.random.normal(k_b2, (1, C), dtype=jnp.float32) * 0.01

    out = net_forward(features, w1, b1, w2, b2)
    out = jax.block_until_ready(out)

    ref = net_forward_ref(features, w1, b1, w2, b2)
    assert out.shape == (N, C)
    assert jnp.allclose(out, ref, atol=1e-3, rtol=1e-3), "mismatch vs reference"

    # TODO(synk): observe()/training paths (cross-entropy loss, Adam step) are host-side
    # training logic, not part of the forward kernel.
    print("KERNEL_OK")
</pallas_src>

<mosaic_0001>
module attributes {stable_mosaic.version = 11 : i64} {
  func.func @_mlp_kernel(%arg0: i32, %arg1: memref<64x32xbf16, #tpu.memory_space<vmem>>, %arg2: memref<32x64xbf16, #tpu.memory_space<vmem>>, %arg3: memref<1x64xf32, #tpu.memory_space<vmem>>, %arg4: memref<64x128xbf16, #tpu.memory_space<vmem>>, %arg5: memref<1x128xf32, #tpu.memory_space<vmem>>, %arg6: memref<64x128xf32, #tpu.memory_space<vmem>>) attributes {dimension_semantics = [#tpu.dimension_semantics<parallel>], iteration_bounds = array<i64: 2>, scalar_prefetch = 0 : i64, scratch_operands = 0 : i64, tpu.core_type = #tpu.core_type<tc>, window_params = [{transform_indices = @transform_0, window_bounds = array<i64: 64, 32>}, {pipeline_mode = #tpu.pipeline_mode<synchronous>, transform_indices = @transform_1, window_bounds = array<i64: 32, 64>}, {pipeline_mode = #tpu.pipeline_mode<synchronous>, transform_indices = @transform_2, window_bounds = array<i64: 1, 64>}, {pipeline_mode = #tpu.pipeline_mode<synchronous>, transform_indices = @transform_3, window_bounds = array<i64: 64, 128>}, {pipeline_mode = #tpu.pipeline_mode<synchronous>, transform_indices = @transform_4, window_bounds = array<i64: 1, 128>}, {transform_indices = @transform_5, window_bounds = array<i64: 64, 128>}]} {
    %c0 = arith.constant 0 : index
    %c0_0 = arith.constant 0 : index
    %0 = vector.load %arg1[%c0, %c0_0] : memref<64x32xbf16, #tpu.memory_space<vmem>>, vector<64x32xbf16>
    %c0_1 = arith.constant 0 : index
    %c0_2 = arith.constant 0 : index
    %1 = vector.load %arg2[%c0_1, %c0_2] : memref<32x64xbf16, #tpu.memory_space<vmem>>, vector<32x64xbf16>
    %cst = arith.constant dense<0.000000e+00> : vector<64x64xf32>
    %2 = tpu.matmul %0, %1, %cst {dimension_numbers = #tpu.dot_dimension_numbers<[1], [0], [0], [1], [0, 0, 1, 1], [], []>} : vector<64x32xbf16>, vector<32x64xbf16>, vector<64x64xf32> -> vector<64x64xf32>
    %c0_3 = arith.constant 0 : index
    %c0_4 = arith.constant 0 : index
    %3 = vector.load %arg3[%c0_3, %c0_4] : memref<1x64xf32, #tpu.memory_space<vmem>>, vector<1x64xf32>
    %4 = vector.broadcast %3 : vector<1x64xf32> to vector<64x64xf32>
    %5 = arith.addf %2, %4 : vector<64x64xf32>
    %cst_5 = arith.constant 0.000000e+00 : f32
    %6 = vector.broadcast %cst_5 : f32 to vector<64x64xf32>
    %7 = arith.maximumf %5, %6 : vector<64x64xf32>
    %8 = arith.truncf %7 : vector<64x64xf32> to vector<64x64xbf16>
    %c0_6 = arith.constant 0 : index
    %c0_7 = arith.constant 0 : index
    %9 = vector.load %arg4[%c0_6, %c0_7] : memref<64x128xbf16, #tpu.memory_space<vmem>>, vector<64x128xbf16>
    %cst_8 = arith.constant dense<0.000000e+00> : vector<64x128xf32>
    %10 = tpu.matmul %8, %9, %cst_8 {dimension_numbers = #tpu.dot_dimension_numbers<[1], [0], [0], [1], [0, 0, 1, 1], [], []>} : vector<64x64xbf16>, vector<64x128xbf16>, vector<64x128xf32> -> vector<64x128xf32>
    %c0_9 = arith.constant 0 : index
    %c0_10 = arith.constant 0 : index
    %11 = vector.load %arg5[%c0_9, %c0_10] : memref<1x128xf32, #tpu.memory_space<vmem>>, vector<1x128xf32>
    %12 = vector.broadcast %11 : vector<1x128xf32> to vector<64x128xf32>
    %13 = arith.addf %10, %12 : vector<64x128xf32>
    %c0_11 = arith.constant 0 : index
    %c0_12 = arith.constant 0 : index
    %14 = vector.load %arg6[%c0_11, %c0_12] : memref<64x128xf32, #tpu.memory_space<vmem>>, vector<64x128xf32>
    tpu.vector_store %arg6[%c0_11, %c0_12], %13 {strides = array<i32>} : memref<64x128xf32, #tpu.memory_space<vmem>>, vector<64x128xf32>,
    return
  }
  func.func @transform_0(%arg0: i32) -> (i32, i32) {
    %c0_i32 = arith.constant 0 : i32
    %c0_i32_0 = arith.constant 0 : i32
    return %arg0, %c0_i32 : i32, i32
  }
  func.func @transform_1(%arg0: i32) -> (i32, i32) {
    %c0_i32 = arith.constant 0 : i32
    %c0_i32_0 = arith.constant 0 : i32
    %c0_i32_1 = arith.constant 0 : i32
    return %c0_i32, %c0_i32_0 : i32, i32
  }
  func.func @transform_2(%arg0: i32) -> (i32, i32) {
    %c0_i32 = arith.constant 0 : i32
    %c0_i32_0 = arith.constant 0 : i32
    %c0_i32_1 = arith.constant 0 : i32
    return %c0_i32, %c0_i32_0 : i32, i32
  }
  func.func @transform_3(%arg0: i32) -> (i32, i32) {
    %c0_i32 = arith.constant 0 : i32
    %c0_i32_0 = arith.constant 0 : i32
    %c0_i32_1 = arith.constant 0 : i32
    return %c0_i32, %c0_i32_0 : i32, i32
  }
  func.func @transform_4(%arg0: i32) -> (i32, i32) {
    %c0_i32 = arith.constant 0 : i32
    %c0_i32_0 = arith.constant 0 : i32
    %c0_i32_1 = arith.constant 0 : i32
    return %c0_i32, %c0_i32_0 : i32, i32
  }
  func.func @transform_5(%arg0: i32) -> (i32, i32) {
    %c0_i32 = arith.constant 0 : i32
    %c0_i32_0 = arith.constant 0 : i32
    return %arg0, %c0_i32 : i32, i32
  }
}

</mosaic_0001>

<bundles_post_ra>
// kernel: tpu_custom_call.1
= control target key start
LH: loop header
LB: loop body
LE: loop exit
PB: predicated region body
PF: predicated region fallthrough
CT: control target
= control target key end

     0   :  { %10 = vsyncpa [#allocation3], 0  ;;  %s923_s0 = inlined_call_operand.vmem [shape: bf16[128,32], index: 0, kind: input, shape index: {}]   ;;  %s924_s1 = inlined_call_operand.vmem [shape: bf16[32,64], index: 1, kind: input, shape index: {}]   ;;  %s925_s2 = inlined_call_operand.vmem [shape: f32[1,64], index: 2, kind: input, shape index: {}]   ;;  %s926_s3 = inlined_call_operand.vmem [shape: bf16[64,128], index: 3, kind: input, shape index: {}]   ;;  %s927_s4 = inlined_call_operand.vmem [shape: f32[1,128], index: 4, kind: input, shape index: {}]   ;;  %s928_s5 = inlined_call_operand.hbm [shape: f32[128,128], index: 5, kind: output, shape index: {}]  }
   0x1   :  { %12 = vsyncpa [#allocation3 + $0x1], 0  ;;  %s790_s18 = smov 0   ;;  %s792_s19 = smov 0  }
   0x2   :  { %s794_s20 = smov 0   ;;  %s796_s21 = smov 0  }
   0x3 LB: > { %s811_s22 = sadd.s32 4294967295, %s755_s21   ;;  %s569_s23 = sadd.s32 4294967294, %s755_s21   ;;  %s755_s21 = sphi %s796_s21, %s934_s21   ;;  %s751_s20 = sphi %s794_s20, %s933_s20   ;;  %s747_s19 = sphi %s792_s19, %s932_s19   ;;  %s743_s18 = sphi %s790_s18, %s931_s18  }
   0x4   : > { %s815_s24 = sadd.s32 1, %s755_s21   ;;  %s135_s25 = sadd.s32 1, %s751_s20 }
   0x5   : > { %s132_s26 = ssub.s32 %s755_s21, %s815_s24  ;;  %p145_p0 = scmp.ne.s32.totalorder %s751_s20, %s747_s19 }
   0x6   : > { %p133_p1 = scmp.eq.s32.totalorder %s132_s26, 0  ;;  %p146_p2 = scmp.eq.s32.totalorder %s811_s22, 1 }
   0x7   : > { %p151_p3 = scmp.ne.s32.totalorder %s747_s19, %s743_s18  ;;  %p152_p4 = scmp.eq.s32.totalorder %s569_s23, 1 }
   0x8   : > { %s826_s27 = scalar_select %p133_p1, %s751_s20, %s135_s25  }
   0x9   : > { %p828_p5 = por %p146_p2, %p145_p0  ;;  %p832_p6 = por %p152_p4, %p151_p3 }
   0xa   : > { %p572_p7 = scmp.ge.s32.totalorder %s755_s21, 1  ;;  %p191_p8 = scmp.lt.s32.totalorder %s755_s21, 3 }
   0xc   : > { %p192_p9 = pnand %p572_p7, %p191_p8 }
   0xd   : > { %s574_s7 = sshll.u32 (!%p192_p9), %s811_s22, 3  ;;  %s216_s8 = sand.u32 (!%p192_p9), 1, %s747_s19  }
   0xe   : > { %195 = sbr.rel (%p192_p9) target bundleno = 457 (0x1c9), region = 40  ;;  %p220_p10 = scmp.lt.s32.totalorder (!%p192_p9), %s574_s7, 15 }
   0xf   : > { %s573_s9 = sshll.u32 (!%p192_p9), %s216_s8, 6  ;;  %s601_s13 = sshll.u32 (!%p192_p9), %s811_s22, 10 }
  0x10   : > { %s877_s17 = scalar_lea.hbm (!%p192_p9), %s928_s5, %s601_s13  ;;  %s883_s22 = scalar_lea.sflag (!%p192_p9), [#allocation3], %s216_s8 }
  0x11   : > { %s757_s25 = smov (!%p192_p9), [#allocation2]  }
  0x12   : > { %s699_s26 = sshll.u32 (!%p192_p9), %s757_s25, 4  ;;  %s700_s26 = int_to_ptr.vmem [resolvable:$false] %s699_s26 }
  0x13   : > { %v685_v0 = vld [vmem:[%s924_s1 + $0x8] sm:$0xff]   ;;  %v686_v1 = vld [vmem:[%s924_s1] sm:$0xff]   ;;  %v691_v2 = vld [vmem:[%s926_s3 + $0x18] sm:$0xff]   ;;  %s936_s7 = smov (!%p220_p10, %s574_s7), 15  ;;  %vm278_vm0 = vcmask 261120   ;;  %vm407_vm1 = vcmask 523264  }
  0x14   : > { %616 = vmatprep.subr.bf16.mxu0 %v685_v0  ;;  %628 = vmatprep.subr.bf16.mxu1 %v691_v2  ;;  %s575_s12 = sshll.u32 %s936_s7, 2  ;;  %v692_v7 = vld [vmem:[%s926_s3 + $0x10] sm:$0xff]   ;;  %v693_v8 = vld [vmem:[%s926_s3 + $0x8] sm:$0xff]   ;;  %v694_v9 = vld [vmem:[%s926_s3] sm:$0xff]   ;;  %s701_s30 = scalar_lea.vmem %s700_s26, 2048 }
  0x15   : > { %617 = vmatpush3.bf16.msra.mxu0 %v685_v0  ;;  %629 = vmatpush3.bf16.msra.mxu1 %v691_v2  ;;  %s223_s15 = scalar_lea.vmem %s923_s0, %s575_s12  ;;  %v576_v12 = vld [vmem:[%s925_s2] ss:$0 sm:$0xff]  ;;  %s218_s12 = scalar_lea.vmem [#allocation2], %s573_s9 }
  0x16   : > { %618 = vmatprep.subr.bf16.mxu0 %v686_v1  ;;  %v687_v3 = vld [vmem:[%s223_s15] sm:$0xff]   ;;  %v688_v4 = vld [vmem:[%s223_s15 + $0x8] sm:$0xff]   ;;  %v689_v5 = vld [vmem:[%s223_s15 + $0x10] sm:$0xff]   ;;  %630 = vmatprep.subr.bf16.mxu1 %v692_v7  ;;  %s507_s14 = sshll.u32 %s218_s12, 4  ;;  %s879_s14 = int_to_ptr.vmem [resolvable:$true] %s507_s14 }
  0x17   : > { %620 = vmatprep.mubr.msk.bf16.mxu0 %vm278_vm0, %v687_v3  ;;  %v690_v6 = vld [vmem:[%s223_s15 + $0x18] sm:$0xff]   ;;  %v587_v39 = vld [vmem:[%s927_s4] ss:$0 sm:$0xff]  ;;  %s695_s23 = scalar_lea.vmem %s879_s14, 1024  ;;  %p702_p0 = scmp.lt.s32.totalorder %s879_s14, %s700_s26 }
  0x18   : > { %p696_p11 = scmp.ne.s32.totalorder %s879_s14, %s695_s23  ;;  %p703_p1 = scmp.lt.s32.totalorder %s701_s30, %s695_s23 }
  0x19   : > { %619 = vmatpush3.bf16.msra.mxu0 %v686_v1  ;;  %631 = vmatpush3.bf16.msra.mxu1 %v692_v7 }
  0x1a   : > { %632 = vmatprep.subr.bf16.mxu1 %v693_v8  ;;  %p697_p12 = pnand %p696_p11, %p828_p5  ;;  %p704_p2 = por %p703_p1, %p702_p0 }
  0x1c   : > { %621 = vmatmul.mubr.msk.bf16.vlgmr.msra.gmra.mxu0 %vm278_vm0, %v688_v4  ;;  %p698_p13 = pneg %p697_p12 }
  0x1d   : > { %624 = vmatprep.mubr.msk.bf16.mxu0 %vm278_vm0, %v689_v5  ;;  %633 = vmatpush3.bf16.msra.mxu1 %v693_v8 }
  0x1e   : > { %634 = vmatprep.subr.bf16.mxu1 %v694_v9  ;;  %p705_p3 = pnand %p704_p2, %p698_p13 }
  0x21   : > { %635 = vmatpush3.bf16.msra.mxu1 %v694_v9 }
  0x24   : > { %625 = vmatmul.mubr.msk.bf16.gmra.mxu0 %vm278_vm0, %v690_v6 }
  0xdc   : > { %v622_v10 = vpop.f32.mrf.mxu0 }
  0xdd   : > { %v334_v16 = vadd.f32 %v622_v10, %v576_v12 }
  0xde   : > { %v325_v11 = vpop.f32.mrf.mxu0 }
  0xdf   : > { %v326_v14 = vadd.f32 %v576_v12, %v325_v11  ;;  %v358_v23 = vmax.f32 %v334_v16, 0.0 }
  0xe0   : > { %v623_v13 = vpop.f32.mrf.mxu0 }
  0xe1   : > { %v337_v15 = vadd.f32 %v623_v13, %v576_v12  ;;  %v356_v21 = vmax.f32 %v326_v14, 0.0 }
  0xe2   : > { %v328_v17 = vpop.f32.mrf.mxu0 }
  0xe3   : > { %v329_v18 = vadd.f32 %v576_v12, %v328_v17  ;;  %v359_v19 = vmax.f32 %v337_v15, 0.0 }
  0xe4   : > { %v626_v20 = vpop.f32.mrf.mxu0 }
  0xe5   : > { %v357_v22 = vmax.f32 %v329_v18, 0.0  ;;  %v365_v26 = vpack.c.bf16 %v359_v19, %v358_v23  ;;  %v350_v30 = vadd.f32 %v626_v20, %v576_v12 }
  0xe6   : > { %v341_v24 = vpop.f32.mrf.mxu0 }
  0xe7   : > { %v364_v25 = vpack.c.bf16 %v357_v22, %v356_v21  ;;  %v342_v28 = vadd.f32 %v576_v12, %v341_v24  ;;  %v362_v36 = vmax.f32 %v350_v30, 0.0 }
  0xe8   : > { %v627_v27 = vpop.f32.mrf.mxu0 }
  0xe9   : > { %v353_v29 = vadd.f32 %v627_v27, %v576_v12  ;;  %636 = vmatprep.mubr.msk.bf16.mxu1 %vm407_vm1, %v364_v25  ;;  %v360_v34 = vmax.f32 %v342_v28, 0.0 }
  0xea   : > { %v344_v31 = vpop.f32.mrf.mxu0  ;;  %637 = vmatmul.mubr.msk.bf16.vlgmr.msra.gmra.mxu1 %vm407_vm1, %v365_v26 }
  0xeb   : > { %v345_v32 = vadd.f32 %v576_v12, %v344_v31  ;;  %v363_v33 = vmax.f32 %v353_v29, 0.0 }
  0xed   : > { %v361_v35 = vmax.f32 %v345_v32, 0.0  ;;  %v367_v38 = vpack.c.bf16 %v363_v33, %v362_v36 }
  0xef   : > { %v366_v37 = vpack.c.bf16 %v361_v35, %v360_v34 }
  0xf1   : > { %640 = vmatprep.mubr.msk.bf16.mxu1 %vm407_vm1, %v366_v37 }
  0xf2   : > { %641 = vmatmul.mubr.msk.bf16.gmra.mxu1 %vm407_vm1, %v367_v38 }
 0x1aa   : > { %v638_v40 = vpop.f32.mrf.mxu1 }
 0x1ab   : > { %v463_v41 = vadd.f32 %v638_v40, %v587_v39 }
 0x1ac   : > { %v454_v42 = vpop.f32.mrf.mxu1 }
 0x1ad   : > { %487 = vst [vmem:[%s218_s12 + $0x10] sm:$0xff] %v463_v41  ;;  %v455_v43 = vadd.f32 %v587_v39, %v454_v42 }
 0x1ae   : > { %v639_v44 = vpop.f32.mrf.mxu1 }
 0x1af   : > { %485 = vst [vmem:[%s218_s12] sm:$0xff] %v455_v43  ;;  %v466_v45 = vadd.f32 %v639_v44, %v587_v39 }
 0x1b0   : > { %v457_v46 = vpop.f32.mrf.mxu1 }
 0x1b1   : > { %488 = vst [vmem:[%s218_s12 + $0x18] sm:$0xff] %v466_v45  ;;  %v458_v47 = vadd.f32 %v587_v39, %v457_v46 }
 0x1b2   : > { %v642_v48 = vpop.f32.mrf.mxu1 }
 0x1b3   : > { %486 = vst [vmem:[%s218_s12 + $0x8] sm:$0xff] %v458_v47  ;;  %v479_v49 = vadd.f32 %v642_v48, %v587_v39 }
 0x1b4   : > { %v470_v50 = vpop.f32.mrf.mxu1 }
 0x1b5   : > { %491 = vst [vmem:[%s218_s12 + $0x30] sm:$0xff] %v479_v49  ;;  %v471_v51 = vadd.f32 %v587_v39, %v470_v50 }
 0x1b6   : > { %v643_v52 = vpop.f32.mrf.mxu1 }
 0x1b7   : > { %489 = vst [vmem:[%s218_s12 + $0x20] sm:$0xff] %v471_v51  ;;  %v482_v53 = vadd.f32 %v643_v52, %v587_v39 }
 0x1b8   : > { %v473_v54 = vpop.f32.mrf.mxu1 }
 0x1b9   : > { %492 = vst [vmem:[%s218_s12 + $0x38] sm:$0xff] %v482_v53  ;;  %v474_v55 = vadd.f32 %v587_v39, %v473_v54 }
 0x1bb   : > { %490 = vst [vmem:[%s218_s12 + $0x28] sm:$0xff] %v474_v55 }
 0x1bc   : > { %708 = shalt.err (!%p705_p3)
}
 0x1bd   : > { %s709_s6 = scalar_lea.hbm %s877_s17, 1024  ;;  %s713_s9 = scalar_lea.hbm %s928_s5, 2048 }
 0x1be   : > { %p710_p4 = scmp.ne.s32.totalorder %s877_s17, %s709_s6  ;;  %p714_p9 = scmp.lt.s32.totalorder %s877_s17, %s928_s5 }
 0x1bf   : > { %p715_p10 = scmp.lt.s32.totalorder %s713_s9, %s709_s6 }
 0x1c0   : > { %p711_p7 = pnand %p710_p4, %p828_p5 }
 0x1c1   : > { %p716_p11 = por %p715_p10, %p714_p9 }
 0x1c2   : > { %p712_p8 = pneg %p711_p7 }
 0x1c4   : > { %p717_p12 = pnand %p716_p11, %p712_p8 }
 0x1c6   : > { %720 = shalt.err (!%p717_p12)
}
 0x1c7   : > { %s758_s12 = smov 128   ;;  %s759_s13 = smov 8  }
 0x1c8   : > { %644 = dma.vmem_to_hbm [thread:$0]  (%p828_p5), %s879_s14, 1024, %s877_s17, %s883_s22, %s758_s12, %s758_s12, %s759_s13  }
 0x1c9 PF: > { %p650_p13 = scmp.ge.s32.totalorder %s755_s21, 2  ;;  %s522_s15 = sand.u32 1, %s743_s18  }
 0x1ca   : > { %s523_s16 = scalar_lea.sflag [#allocation3], %s522_s15 }
 0x1cb   : > { %p647_p0 = pnand %p650_p13, %p832_p6 }
 0x1cd   : > { %p648_p1 = pneg %p647_p0 }
 0x1cf   : > { %738 = dma.done.wait (%p648_p1), %s523_s16, 1024  }
 0x1d0   : > { %740 = vsyncadd (%p648_p1), %s523_s16, 4294966272  ;;  %p15_p2 = scmp.ge.s32.totalorder %s815_s24, 4   ;;  %s931_s18 = smov %s747_s19 }
 0x1d1   : > { %s932_s19 = smov %s751_s20  ;;  %s933_s20 = smov %s826_s27 }
 0x1d2   : > { %s934_s21 = smov %s815_s24  ;;  %17 = sbr.rel (!%p15_p2) target bundleno = 3 (0x3), region = 75 }
 0x1d7   :  { %528 = vsyncpa [#allocation3], 1 }
 0x1d8   :  { %530 = vsyncpa [#allocation3 + $0x1], 1 }

</bundles_post_ra>
